<compile_context>
chip_gen: v6e
topology: v6e:2x2x1
jax: 0.10.0
libtpu: 0.0.40
codegen_flags: <defaults>
</compile_context>

<pallas_src>
import jax
import jax.numpy as jnp
from jax.experimental import pallas as pl
from jax.experimental.pallas import tpu as pltpu

NUM_INPUTS = 36
HIDDEN = 64
NUM_OUTPUT = 1


def mlp_kernel(x_ref, w1_ref, b1_ref, w2_ref, b2_ref, o_ref):
    # x: (tile_b, 36) f32    w1: (64, 36) bf16   b1: (64, 1) f32
    # w2: (64, 1) f32        b2: (1, 1)  f32 (SMEM)   o: (1, tile_b) f32
    xb = x_ref[...].astype(jnp.bfloat16)                        # in-kernel cast (cheap VPU pack)
    # Layer 1: contract the feature axis of x directly -> h is (64, tile_b),
    # i.e. batch on lanes, with no materialized transpose of x.
    h = jax.lax.dot_general(
        w1_ref[...], xb,
        dimension_numbers=(((1,), (1,)), ((), ())),
        preferred_element_type=jnp.float32)
    h = jnp.maximum(h + b1_ref[...], 0.0)                       # bias + ReLU, f32
    # Layer 2 on the VPU/XLU instead of the MXU: broadcast-mul by the (64, 1)
    # w2 column and reduce over the 64 hidden sublanes.
    y = jnp.sum(h * w2_ref[...], axis=0, keepdims=True) + b2_ref[0, 0]   # (1, tile_b)
    # sigmoid: exp + approx reciprocal both run on the EUP slot (VALU stays free)
    o_ref[...] = pl.reciprocal(1.0 + jnp.exp(-y), approx=True)


def _ceil_to(v, m):
    return ((v + m - 1) // m) * m


def mlp_forward(x, w1, b1, w2, b2, *, tile_b=16384):
    """x: (B, 36) f32; w1: (64, 36); b1: (64,); w2: (1, 64); b2: (1,). -> (B, 1) f32."""
    B = x.shape[0]
    # Keep tile_b a multiple of 128 (lane-dense output block, sublane-aligned x
    # block) and never (much) larger than the batch itself.
    tile_b = _ceil_to(max(int(tile_b), 128), 128)
    tile_b = min(tile_b, _ceil_to(B, 128))
    num_tiles = pl.cdiv(B, tile_b)

    w1b = w1.astype(jnp.bfloat16)                               # (64, 36) == PyTorch layout, tiny
    b1c = b1.reshape(HIDDEN, 1).astype(jnp.float32)
    w2c = w2.reshape(HIDDEN, 1).astype(jnp.float32)             # column for the VPU layer-2
    b2c = b2.reshape(1, 1).astype(jnp.float32)

    out = pl.pallas_call(
        mlp_kernel,
        out_shape=jax.ShapeDtypeStruct((1, B), jnp.float32),
        grid=(num_tiles,),
        in_specs=[
            # x streams one (tile_b, 36) batch block per grid step (ragged tail
            # block is masked by Pallas); weights / biases stay VMEM-resident.
            pl.BlockSpec((tile_b, NUM_INPUTS), lambda i: (i, 0)),
            pl.BlockSpec((HIDDEN, NUM_INPUTS), lambda i: (0, 0)),
            pl.BlockSpec((HIDDEN, 1), lambda i: (0, 0)),
            pl.BlockSpec((HIDDEN, 1), lambda i: (0, 0)),
            pl.BlockSpec(memory_space=pltpu.MemorySpace.SMEM),   # b2 as SMEM scalar
        ],
        out_specs=pl.BlockSpec((1, tile_b), lambda i: (0, i)),   # lane-dense output row
        compiler_params=pltpu.CompilerParams(
            dimension_semantics=("parallel",),                   # shard tiles across TCs on v7x
            vmem_limit_bytes=48 * 1024 * 1024,                   # >16 MiB v5e default, < v7x physical
        ),
    )(x, w1b, b1c, w2c, b2c)

    return out[0, :B][:, None]                                   # (B, 1), PyTorch output shape


def init_params(key):
    # PyTorch default nn.Linear init: U(-1/sqrt(fan_in), 1/sqrt(fan_in)), (out, in) layout.
    k1, k2, k3, k4 = jax.random.split(key, 4)
    bound1 = 1.0 / jnp.sqrt(jnp.float32(NUM_INPUTS))
    bound2 = 1.0 / jnp.sqrt(jnp.float32(HIDDEN))
    w1 = jax.random.uniform(k1, (HIDDEN, NUM_INPUTS), jnp.float32, -bound1, bound1)
    b1 = jax.random.uniform(k2, (HIDDEN,), jnp.float32, -bound1, bound1)
    w2 = jax.random.uniform(k3, (NUM_OUTPUT, HIDDEN), jnp.float32, -bound2, bound2)
    b2 = jax.random.uniform(k4, (NUM_OUTPUT,), jnp.float32, -bound2, bound2)
    return w1, b1, w2, b2


if __name__ == "__main__":
    key = jax.random.PRNGKey(0)
    kx, kp = jax.random.split(key)
    batch = 300                      # not a tile multiple -> exercises the masked ragged tail
    x = jax.random.normal(kx, (batch, NUM_INPUTS), jnp.float32)
    w1, b1, w2, b2 = init_params(kp)

    # plain-JAX f32 reference of the PyTorch forward
    ref = jax.nn.sigmoid(jnp.maximum(x @ w1.T + b1, 0.0) @ w2.T + b2)

    # Default tile (clamps to the 128-rounded batch): single partial block.
    out = mlp_forward(x, w1, b1, w2, b2)
    jax.block_until_ready(out)
    assert out.shape == (batch, NUM_OUTPUT), out.shape
    assert jnp.allclose(out, ref, atol=1e-2, rtol=1e-2), float(jnp.max(jnp.abs(out - ref)))

    # Small tile: exercises the multi-tile grid + ragged tail masking path.
    out2 = mlp_forward(x, w1, b1, w2, b2, tile_b=256)
    jax.block_until_ready(out2)
    assert jnp.allclose(out2, ref, atol=1e-2, rtol=1e-2), float(jnp.max(jnp.abs(out2 - ref)))

    print("KERNEL_OK")
</pallas_src>

<mosaic_0001>
module attributes {stable_mosaic.version = 11 : i64} {
  func.func @mlp_kernel(%arg0: i32, %arg1: memref<384x36xf32, #tpu.memory_space<vmem>>, %arg2: memref<64x36xbf16, #tpu.memory_space<vmem>>, %arg3: memref<64x1xf32, #tpu.memory_space<vmem>>, %arg4: memref<64x1xf32, #tpu.memory_space<vmem>>, %arg5: memref<1x1xf32, #tpu.memory_space<smem>>, %arg6: memref<1x384xf32, #tpu.memory_space<vmem>>) attributes {dimension_semantics = [#tpu.dimension_semantics<parallel>], iteration_bounds = array<i64: 1>, scalar_prefetch = 0 : i64, scratch_operands = 0 : i64, tpu.core_type = #tpu.core_type<tc>, window_params = [{transform_indices = @transform_0, window_bounds = array<i64: 384, 36>}, {pipeline_mode = #tpu.pipeline_mode<synchronous>, transform_indices = @transform_1, window_bounds = array<i64: 64, 36>}, {pipeline_mode = #tpu.pipeline_mode<synchronous>, transform_indices = @transform_2, window_bounds = array<i64: 64, 1>}, {pipeline_mode = #tpu.pipeline_mode<synchronous>, transform_indices = @transform_3, window_bounds = array<i64: 64, 1>}, {transform_indices = @transform_4, window_bounds = array<i64: 1, 1>}, {transform_indices = @transform_5, window_bounds = array<i64: 1, 384>}]} {
    %c0 = arith.constant 0 : index
    %c0_0 = arith.constant 0 : index
    %0 = vector.load %arg1[%c0, %c0_0] : memref<384x36xf32, #tpu.memory_space<vmem>>, vector<384x36xf32>
    %1 = arith.truncf %0 : vector<384x36xf32> to vector<384x36xbf16>
    %c0_1 = arith.constant 0 : index
    %c0_2 = arith.constant 0 : index
    %2 = vector.load %arg2[%c0_1, %c0_2] : memref<64x36xbf16, #tpu.memory_space<vmem>>, vector<64x36xbf16>
    %cst = arith.constant dense<0.000000e+00> : vector<64x384xf32>
    %3 = tpu.matmul %2, %1, %cst {dimension_numbers = #tpu.dot_dimension_numbers<[1], [1], [0], [0], [0, 0, 1, 0], [], []>} : vector<64x36xbf16>, vector<384x36xbf16>, vector<64x384xf32> -> vector<64x384xf32>
    %c0_3 = arith.constant 0 : index
    %c0_4 = arith.constant 0 : index
    %4 = vector.load %arg3[%c0_3, %c0_4] : memref<64x1xf32, #tpu.memory_space<vmem>>, vector<64x1xf32>
    %5 = vector.broadcast %4 : vector<64x1xf32> to vector<64x384xf32>
    %6 = arith.addf %3, %5 : vector<64x384xf32>
    %cst_5 = arith.constant 0.000000e+00 : f32
    %7 = vector.broadcast %cst_5 : f32 to vector<64x384xf32>
    %8 = arith.maximumf %6, %7 : vector<64x384xf32>
    %c0_6 = arith.constant 0 : index
    %c0_7 = arith.constant 0 : index
    %9 = vector.load %arg4[%c0_6, %c0_7] : memref<64x1xf32, #tpu.memory_space<vmem>>, vector<64x1xf32>
    %10 = vector.broadcast %9 : vector<64x1xf32> to vector<64x384xf32>
    %11 = arith.mulf %8, %10 : vector<64x384xf32>
    %cst_8 = arith.constant dense<0.000000e+00> : vector<384xf32>
    %12 = vector.multi_reduction <add>, %11, %cst_8 [0] : vector<64x384xf32> to vector<384xf32>
    %13 = vector.shape_cast %12 : vector<384xf32> to vector<1x384xf32>
    %c0_9 = arith.constant 0 : index
    %c0_10 = arith.constant 0 : index
    %14 = memref.load %arg5[%c0_9, %c0_10] : memref<1x1xf32, #tpu.memory_space<smem>>
    %15 = vector.broadcast %14 : f32 to vector<1x384xf32>
    %16 = arith.addf %13, %15 : vector<1x384xf32>
    %cst_11 = arith.constant 0.000000e+00 : f32
    %17 = vector.broadcast %cst_11 : f32 to vector<1x384xf32>
    %18 = arith.subf %17, %16 : vector<1x384xf32>
    %19 = math.exp %18 : vector<1x384xf32>
    %cst_12 = arith.constant 1.000000e+00 : f32
    %20 = vector.broadcast %cst_12 : f32 to vector<1x384xf32>
    %21 = arith.addf %20, %19 : vector<1x384xf32>
    %22 = tpu.reciprocal %21 {approx = true} : vector<1x384xf32> -> vector<1x384xf32>
    %c0_13 = arith.constant 0 : index
    %c0_14 = arith.constant 0 : index
    %23 = vector.load %arg6[%c0_13, %c0_14] : memref<1x384xf32, #tpu.memory_space<vmem>>, vector<1x384xf32>
    tpu.vector_store %arg6[%c0_13, %c0_14], %22 {strides = array<i32>} : memref<1x384xf32, #tpu.memory_space<vmem>>, vector<1x384xf32>,
    return
  }
  func.func @transform_0(%arg0: i32) -> (i32, i32) {
    %c0_i32 = arith.constant 0 : i32
    %c0_i32_0 = arith.constant 0 : i32
    return %arg0, %c0_i32 : i32, i32
  }
  func.func @transform_1(%arg0: i32) -> (i32, i32) {
    %c0_i32 = arith.constant 0 : i32
    %c0_i32_0 = arith.constant 0 : i32
    %c0_i32_1 = arith.constant 0 : i32
    return %c0_i32, %c0_i32_0 : i32, i32
  }
  func.func @transform_2(%arg0: i32) -> (i32, i32) {
    %c0_i32 = arith.constant 0 : i32
    %c0_i32_0 = arith.constant 0 : i32
    %c0_i32_1 = arith.constant 0 : i32
    return %c0_i32, %c0_i32_0 : i32, i32
  }
  func.func @transform_3(%arg0: i32) -> (i32, i32) {
    %c0_i32 = arith.constant 0 : i32
    %c0_i32_0 = arith.constant 0 : i32
    %c0_i32_1 = arith.constant 0 : i32
    return %c0_i32, %c0_i32_0 : i32, i32
  }
  func.func @transform_4(%arg0: i32) -> (i32, i32) {
    %c0_i32 = arith.constant 0 : i32
    %c0_i32_0 = arith.constant 0 : i32
    %c0_i32_1 = arith.constant 0 : i32
    return %c0_i32, %c0_i32_0 : i32, i32
  }
  func.func @transform_5(%arg0: i32) -> (i32, i32) {
    %c0_i32 = arith.constant 0 : i32
    %c0_i32_0 = arith.constant 0 : i32
    return %c0_i32, %arg0 : i32, i32
  }
}

</mosaic_0001>

<bundles_post_ra>
// kernel: tpu_custom_call.1
= control target key start
LH: loop header
LB: loop body
LE: loop exit
PB: predicated region body
PF: predicated region fallthrough
CT: control target
= control target key end

     0   :  { %vm171_vm0 = vcmask 293888   ;;  %v726_v7 = vmov 0   ;;  %s1063_s0 = inlined_call_operand.vmem [shape: f32[300,36], index: 0, kind: input, shape index: {}]   ;;  %s1064_s1 = inlined_call_operand.vmem [shape: bf16[64,36], index: 1, kind: input, shape index: {}]   ;;  %s1065_s2 = inlined_call_operand.vmem [shape: f32[64,1], index: 2, kind: input, shape index: {}]   ;;  %s1066_s3 = inlined_call_operand.vmem [shape: f32[64,1], index: 3, kind: input, shape index: {}]   ;;  %s1067_s4 = inlined_call_operand.<no memory space> [shape: f32[1,1], index: 4, kind: input, shape index: {}]   ;;  %s1068_s5 = inlined_call_operand.hbm [shape: f32[1,300], index: 5, kind: output, shape index: {}]  }
   0x1   :  { %v53_v0 = vld [vmem:[%s1063_s0 + $0xf0] sm:$0xff]  ;;  %v54_v1 = vld [vmem:[%s1063_s0 + $0xf8] sm:$0xff]  ;;  %686 = vset.pattern.permute.xlu0 %v726_v7  ;;  %687 = vset.pattern.permute.xlu1 %v726_v7  ;;  %v51_v10 = vld [vmem:[%s1063_s0 + $0xe0] sm:$0xff] }
   0x2   :  { %v69_v2 = vld [vmem:[%s1063_s0 + $0x170] sm:$0xff]  ;;  %v86_v3 = vpack.c.bf16 %v54_v1, %v53_v0  ;;  %v70_v4 = vld [vmem:[%s1063_s0 + $0x178] sm:$0xff]  ;;  %v52_v11 = vld [vmem:[%s1063_s0 + $0xe8] sm:$0xff] }
   0x3   :  { %v37_v5 = vld [vmem:[%s1063_s0 + $0x70] sm:$0xff]  ;;  %v38_v6 = vld [vmem:[%s1063_s0 + $0x78] sm:$0xff]  ;;  %v94_v8 = vpack.c.bf16 %v70_v4, %v69_v2  ;;  %v67_v12 = vld [vmem:[%s1063_s0 + $0x160] sm:$0xff]  ;;  %v85_v13 = vpack.c.bf16 %v52_v11, %v51_v10 }
   0x4   :  { %v78_v9 = vpack.c.bf16 %v38_v6, %v37_v5  ;;  %667 = vmatprep.subr.msk.bf16.mxu0 %vm171_vm0, %v86_v3  ;;  %v68_v14 = vld [vmem:[%s1063_s0 + $0x168] sm:$0xff]  ;;  %v35_v15 = vld [vmem:[%s1063_s0 + $0x60] sm:$0xff]  ;;  %v49_v21 = vld [vmem:[%s1063_s0 + $0xd0] sm:$0xff] }
   0x5   :  { %v36_v16 = vld [vmem:[%s1063_s0 + $0x68] sm:$0xff]  ;;  %675 = vmatprep.subr.msk.bf16.mxu1 %vm171_vm0, %v94_v8  ;;  %v254_v18 = vsel %vm171_vm0, %v94_v8, 0  ;;  %v93_v19 = vpack.c.bf16 %v68_v14, %v67_v12  ;;  %v50_v22 = vld [vmem:[%s1063_s0 + $0xd8] sm:$0xff]  ;;  %v65_v23 = vld [vmem:[%s1063_s0 + $0x150] sm:$0xff] }
   0x6   :  { %v206_v17 = vsel %vm171_vm0, %v78_v9, 0  ;;  %644 = vmatpush3.bf16.xpose.msra.mxu1 %v254_v18  ;;  %v77_v20 = vpack.c.bf16 %v36_v16, %v35_v15  ;;  %v66_v24 = vld [vmem:[%s1063_s0 + $0x158] sm:$0xff]  ;;  %v84_v27 = vpack.c.bf16 %v50_v22, %v49_v21  ;;  %v33_v29 = vld [vmem:[%s1063_s0 + $0x50] sm:$0xff]  ;;  %v47_v32 = vld [vmem:[%s1063_s0 + $0xc0] sm:$0xff] }
   0x7   :  { %608 = vmatpush3.bf16.xpose.msra.mxu0 %v206_v17  ;;  %676 = vmatprep.subr.msk.bf16.mxu1 %vm171_vm0, %v93_v19  ;;  %v251_v26 = vsel %vm171_vm0, %v93_v19, 0  ;;  %v92_v28 = vpack.c.bf16 %v66_v24, %v65_v23  ;;  %v34_v30 = vld [vmem:[%s1063_s0 + $0x58] sm:$0xff]  ;;  %v48_v33 = vld [vmem:[%s1063_s0 + $0xc8] sm:$0xff]  ;;  %v63_v34 = vld [vmem:[%s1063_s0 + $0x140] sm:$0xff] }
   0x8   :  { %668 = vmatprep.subr.msk.bf16.mxu0 %vm171_vm0, %v85_v13  ;;  %v203_v25 = vsel %vm171_vm0, %v77_v20, 0  ;;  %v76_v31 = vpack.c.bf16 %v34_v30, %v33_v29  ;;  %v64_v35 = vld [vmem:[%s1063_s0 + $0x148] sm:$0xff]  ;;  %v838_v36 = vld [vmem:[%s1064_s1] sm:$0xff]   ;;  %v83_v39 = vpack.c.bf16 %v48_v33, %v47_v32  ;;  %v105_v44 = vld [vmem:[%s1065_s2 + $0x10] sm:$0xff] }
   0x9   :  { %v248_v38 = vsel %vm171_vm0, %v92_v28, 0  ;;  %v91_v40 = vpack.c.bf16 %v64_v35, %v63_v34  ;;  %v31_v41 = vld [vmem:[%s1063_s0 + $0x40] sm:$0xff]  ;;  %v32_v42 = vld [vmem:[%s1063_s0 + $0x48] sm:$0xff]  ;;  %623 = vmatprep.mubr.msk.bf16.mxu0 %vm171_vm0, %v838_v36  ;;  %659 = vmatprep.mubr.msk.bf16.mxu1 %vm171_vm0, %v838_v36  ;;  %v45_v46 = vld [vmem:[%s1063_s0 + $0xb0] sm:$0xff] }
   0xa   :  { %v200_v37 = vsel %vm171_vm0, %v76_v31, 0  ;;  %v103_v43 = vld [vmem:[%s1065_s2] sm:$0xff]  ;;  %v75_v45 = vpack.c.bf16 %v32_v42, %v31_v41  ;;  %v46_v47 = vld [vmem:[%s1063_s0 + $0xb8] sm:$0xff]  ;;  %v61_v48 = vld [vmem:[%s1063_s0 + $0x130] sm:$0xff]  ;;  %123 = vperm.xlu1 %687, %v105_v44  }
   0xb   :  { %v62_v49 = vld [vmem:[%s1063_s0 + $0x138] sm:$0xff]  ;;  %113 = vperm.xlu0 %686, %v103_v43   ;;  %v104_v50 = vld [vmem:[%s1065_s2 + $0x8] sm:$0xff] }
   0xc   :  { %v106_v51 = vld [vmem:[%s1065_s2 + $0x18] sm:$0xff] }
   0xe   :  { %646 = vmatpush3.bf16.xpose.msra.mxu1 %v251_v26 }
   0xf   :  { %610 = vmatpush3.bf16.xpose.msra.mxu0 %v203_v25  ;;  %677 = vmatprep.subr.msk.bf16.mxu1 %vm171_vm0, %v92_v28 }
  0x10   :  { %669 = vmatprep.subr.msk.bf16.mxu0 %vm171_vm0, %v84_v27 }
  0x16   :  { %648 = vmatpush3.bf16.xpose.msra.mxu1 %v248_v38 }
  0x17   :  { %612 = vmatpush3.bf16.xpose.msra.mxu0 %v200_v37  ;;  %678 = vmatprep.subr.msk.bf16.mxu1 %vm171_vm0, %v91_v40 }
  0x18   :  { %670 = vmatprep.subr.msk.bf16.mxu0 %vm171_vm0, %v83_v39 }
  0x19   :  { %11 = vsyncpa [#allocation4], 0  ;;  %v197_v52 = vsel %vm171_vm0, %v75_v45, 0  ;;  %v245_v53 = vsel %vm171_vm0, %v91_v40, 0  ;;  %v82_v54 = vpack.c.bf16 %v46_v47, %v45_v46  ;;  %v90_v55 = vpack.c.bf16 %v62_v49, %v61_v48  ;;  %v29_v56 = vld [vmem:[%s1063_s0 + $0x30] sm:$0xff]  ;;  %v30_v57 = vld [vmem:[%s1063_s0 + $0x38] sm:$0xff]  ;;  %118 = vperm.xlu0 %686, %v104_v50   ;;  %128 = vperm.xlu1 %687, %v106_v51  }
  0x1a   :  { %v418_v58 = vld [vmem:[%s1066_s3] sm:$0xff]  ;;  %v419_v59 = vld [vmem:[%s1066_s3 + $0x8] sm:$0xff]  ;;  %v74_v60 = vpack.c.bf16 %v30_v57, %v29_v56  ;;  %v420_v2 = vld [vmem:[%s1066_s3 + $0x10] sm:$0xff] }
  0x1b   :  { %v43_v61 = vld [vmem:[%s1063_s0 + $0xa0] sm:$0xff]  ;;  %v44_v62 = vld [vmem:[%s1063_s0 + $0xa8] sm:$0xff]  ;;  %v242_v4 = vsel %vm171_vm0, %v90_v55, 0  ;;  %v421_v10 = vld [vmem:[%s1066_s3 + $0x18] sm:$0xff] }
  0x1c   :  { %v59_v63 = vld [vmem:[%s1063_s0 + $0x120] sm:$0xff]  ;;  %v60_v0 = vld [vmem:[%s1063_s0 + $0x128] sm:$0xff]  ;;  %v194_v3 = vsel %vm171_vm0, %v74_v60, 0  ;;  %v81_v5 = vpack.c.bf16 %v44_v62, %v43_v61  ;;  %v41_v12 = vld [vmem:[%s1063_s0 + $0x90] sm:$0xff] }
  0x1d   :  { %428 = vperm.xlu0 %686, %v418_v58   ;;  %433 = vperm.xlu1 %687, %v419_v59   ;;  %v107_v1 = vld [vmem:[%s1065_s2 + $0x20] sm:$0xff]  ;;  %v89_v6 = vpack.c.bf16 %v60_v0, %v59_v63  ;;  %v28_v8 = vld [vmem:[%s1063_s0 + $0x28] sm:$0xff]  ;;  %v42_v13 = vld [vmem:[%s1063_s0 + $0x98] sm:$0xff] }
  0x1e   :  { %650 = vmatpush3.bf16.xpose.msra.mxu1 %v245_v53  ;;  %v27_v7 = vld [vmem:[%s1063_s0 + $0x20] sm:$0xff]  ;;  %v108_v9 = vld [vmem:[%s1065_s2 + $0x28] sm:$0xff]  ;;  %v57_v14 = vld [vmem:[%s1063_s0 + $0x110] sm:$0xff]  ;;  %v80_v20 = vpack.c.bf16 %v42_v13, %v41_v12 }
  0x1f   :  { %614 = vmatpush3.bf16.xpose.msra.mxu0 %v197_v52  ;;  %679 = vmatprep.subr.msk.bf16.mxu1 %vm171_vm0, %v90_v55  ;;  %v73_v11 = vpack.c.bf16 %v28_v8, %v27_v7  ;;  %v58_v15 = vld [vmem:[%s1063_s0 + $0x118] sm:$0xff]  ;;  %v109_v16 = vld [vmem:[%s1065_s2 + $0x30] sm:$0xff]  ;;  %v422_v17 = vld [vmem:[%s1066_s3 + $0x20] sm:$0xff]  ;;  %v239_v19 = vsel %vm171_vm0, %v89_v6, 0 }
  0x20   :  { %671 = vmatprep.subr.msk.bf16.mxu0 %vm171_vm0, %v82_v54  ;;  %v88_v21 = vpack.c.bf16 %v58_v15, %v57_v14  ;;  %v25_v22 = vld [vmem:[%s1063_s0 + $0x10] sm:$0xff]  ;;  %v26_v23 = vld [vmem:[%s1063_s0 + $0x18] sm:$0xff]  ;;  %v423_v25 = vld [vmem:[%s1066_s3 + $0x28] sm:$0xff] }
  0x21   :  { %133 = vperm.xlu0 %686, %v107_v1   ;;  %438 = vperm.xlu1 %687, %v420_v2   ;;  %v191_v18 = vsel %vm171_vm0, %v73_v11, 0  ;;  %v110_v24 = vld [vmem:[%s1065_s2 + $0x38] sm:$0xff]  ;;  %v72_v26 = vpack.c.bf16 %v26_v23, %v25_v22  ;;  %v39_v27 = vld [vmem:[%s1063_s0 + $0x80] sm:$0xff]  ;;  %v40_v28 = vld [vmem:[%s1063_s0 + $0x88] sm:$0xff] }
  0x22   :  { %v55_v29 = vld [vmem:[%s1063_s0 + $0x100] sm:$0xff]  ;;  %v56_v30 = vld [vmem:[%s1063_s0 + $0x108] sm:$0xff]  ;;  %v424_v31 = vld [vmem:[%s1066_s3 + $0x30] sm:$0xff]  ;;  %v236_v34 = vsel %vm171_vm0, %v88_v21, 0  ;;  %v79_v35 = vpack.c.bf16 %v40_v28, %v39_v27 }
  0x23   :  { %v425_v32 = vld [vmem:[%s1066_s3 + $0x38] sm:$0xff]  ;;  %v188_v33 = vsel %vm171_vm0, %v72_v26, 0  ;;  %v87_v37 = vpack.c.bf16 %v56_v30, %v55_v29  ;;  %v23_v38 = vld [vmem:[%s1063_s0] sm:$0xff]  ;;  %v24_v39 = vld [vmem:[%s1063_s0 + $0x8] sm:$0xff] }
  0x24   :  { %v71_v40 = vpack.c.bf16 %v24_v39, %v23_v38  ;;  %v689_v43 = vld [vmem:[%s1064_s1 + $0x8] sm:$0xff]   ;;  %v690_v44 = vld [vmem:[%s1064_s1 + $0x10] sm:$0xff]   ;;  %v691_v45 = vld [vmem:[%s1064_s1 + $0x18] sm:$0xff]  }
  0x25   :  { %138 = vperm.xlu0 %686, %v108_v9   ;;  %443 = vperm.xlu1 %687, %v421_v10   ;;  %v233_v42 = vsel %vm171_vm0, %v87_v37, 0 }
  0x26   :  { %652 = vmatpush3.bf16.xpose.msra.mxu1 %v242_v4  ;;  %v185_v41 = vsel %vm171_vm0, %v71_v40, 0 }
  0x27   :  { %616 = vmatpush3.bf16.xpose.msra.mxu0 %v194_v3  ;;  %680 = vmatprep.subr.msk.bf16.mxu1 %vm171_vm0, %v89_v6 }
  0x28   :  { %672 = vmatprep.subr.msk.bf16.mxu0 %vm171_vm0, %v81_v5 }
  0x29   :  { %143 = vperm.xlu0 %686, %v109_v16   ;;  %448 = vperm.xlu1 %687, %v422_v17  }
  0x2d   :  { %148 = vperm.xlu0 %686, %v110_v24   ;;  %453 = vperm.xlu1 %687, %v423_v25  }
  0x2e   :  { %654 = vmatpush3.bf16.xpose.msra.mxu1 %v239_v19 }
  0x2f   :  { %618 = vmatpush3.bf16.xpose.msra.mxu0 %v191_v18  ;;  %681 = vmatprep.subr.msk.bf16.mxu1 %vm171_vm0, %v88_v21 }
  0x30   :  { %673 = vmatprep.subr.msk.bf16.mxu0 %vm171_vm0, %v80_v20 }
  0x31   :  { %458 = vperm.xlu0 %686, %v424_v31   ;;  %463 = vperm.xlu1 %687, %v425_v32  }
  0x36   :  { %656 = vmatpush3.bf16.xpose.msra.mxu1 %v236_v34 }
  0x37   :  { %620 = vmatpush3.bf16.xpose.msra.mxu0 %v188_v33  ;;  %682 = vmatprep.subr.msk.bf16.mxu1 %vm171_vm0, %v87_v37 }
  0x38   :  { %674 = vmatprep.subr.msk.bf16.mxu0 %vm171_vm0, %v79_v35 }
  0x3e   :  { %658 = vmatpush3.bf16.xpose.msra.mxu1 %v233_v42 }
  0x3f   :  { %622 = vmatpush3.bf16.xpose.msra.mxu0 %v185_v41 }
  0x45   :  { %660 = vmatmul.mubr.msk.bf16.vlgmr.msra.gmra.mxu1 %vm171_vm0, %v689_v43 }
  0x46   :  { %624 = vmatmul.mubr.msk.bf16.vlgmr.msra.gmra.mxu0 %vm171_vm0, %v838_v36  ;;  %663 = vmatprep.mubr.msk.bf16.mxu1 %vm171_vm0, %v690_v44 }
  0x47   :  { %625 = vmatprep.mubr.msk.bf16.mxu0 %vm171_vm0, %v689_v43 }
  0x4d   :  { %664 = vmatmul.mubr.msk.bf16.gmra.mxu1 %vm171_vm0, %v691_v45 }
  0x4e   :  { %626 = vmatmul.mubr.msk.bf16.gmra.mxu0 %vm171_vm0, %v689_v43 }
  0x4f   :  { %627 = vmatprep.mubr.msk.bf16.mxu0 %vm171_vm0, %v690_v44 }
  0x56   :  { %628 = vmatmul.mubr.msk.bf16.gmra.mxu0 %vm171_vm0, %v690_v44 }
  0x57   :  { %629 = vmatprep.mubr.msk.bf16.mxu0 %vm171_vm0, %v691_v45 }
  0x5e   :  { %630 = vmatmul.mubr.msk.bf16.gmra.mxu0 %vm171_vm0, %v691_v45 }
  0x85   :  { %v124_v46 = vpop.permute.xlu1 %123 }
  0x86   :  { %v114_v36 = vpop.permute.xlu0 %113 }
  0x94   :  { %v119_v47 = vpop.permute.xlu0 %118  ;;  %v129_v48 = vpop.permute.xlu1 %128 }
  0x98   :  { %v1012_v49 = vpop.permute.xlu0 %428  ;;  %v1014_v50 = vpop.permute.xlu1 %433 }
  0x9c   :  { %v1016_v51 = vpop.permute.xlu0 %133  ;;  %v1018_v52 = vpop.permute.xlu1 %438 }
  0xa0   :  { %v1020_v55 = vpop.permute.xlu0 %138  ;;  %v1022_v58 = vpop.permute.xlu1 %443 }
  0xa4   :  { %v1024_v1 = vpop.permute.xlu0 %143  ;;  %v1026_v7 = vpop.permute.xlu1 %448 }
  0xa8   :  { %v1032_v24 = vpop.permute.xlu0 %148  ;;  %v454_v40 = vpop.permute.xlu1 %453 }
 0x105   :  { %v661_v54 = vpop.f32.mrf.mxu1 }
 0x106   :  { %v290_v53 = vpop.f32.mrf.mxu0  ;;  %v372_v62 = vadd.f32 %v661_v54, %v124_v46 }
 0x107   :  { %v363_v57 = vpop.f32.mrf.mxu1  ;;  %v291_v8 = vadd.f32 %v290_v53, %v114_v36 }
 0x108   :  { %v292_v56 = vpop.f32.mrf.mxu0  ;;  %v364_v59 = vadd.f32 %v363_v57, %v114_v36  ;;  %v402_v9 = vmax.f32 %v372_v62, 0.0 }
 0x109   :  { %v662_v61 = vpop.f32.mrf.mxu1  ;;  %v293_v10 = vadd.f32 %v292_v56, %v114_v36  ;;  %v394_v25 = vmax.f32 %v291_v8, 0.0 }
 0x10a   :  { %v294_v60 = vpop.f32.mrf.mxu0  ;;  %v396_v2 = vmax.f32 %v364_v59, 0.0  ;;  %v375_v3 = vadd.f32 %v662_v61, %v129_v48  ;;  %v474_v26 = vmul.f32 %v1018_v52, %v402_v9 }
 0x10b   :  { %v366_v0 = vpop.f32.mrf.mxu1  ;;  %v295_v12 = vadd.f32 %v294_v60, %v119_v47  ;;  %v395_v27 = vmax.f32 %v293_v10, 0.0  ;;  %v466_v54 = vmul.f32 %v1012_v49, %v394_v25 }
 0x10c   :  { %v296_v63 = vpop.f32.mrf.mxu0  ;;  %v367_v4 = vadd.f32 %v366_v0, %v119_v47  ;;  %v468_v15 = vmul.f32 %v1012_v49, %v396_v2  ;;  %v405_v16 = vmax.f32 %v375_v3, 0.0 }
 0x10d   :  { %v665_v6 = vpop.f32.mrf.mxu1  ;;  %v297_v18 = vadd.f32 %v296_v63, %v119_v47  ;;  %v397_v29 = vmax.f32 %v295_v12, 0.0  ;;  %v467_v61 = vmul.f32 %v1012_v49, %v395_v27 }
 0x10e   :  { %v300_v5 = vpop.f32.mrf.mxu0  ;;  %v399_v11 = vmax.f32 %v367_v4, 0.0  ;;  %v388_v20 = vadd.f32 %v665_v6, %v1024_v1  ;;  %v477_v35 = vmul.f32 %v1022_v58, %v405_v16 }
 0x10f   :  { %v379_v14 = vpop.f32.mrf.mxu1  ;;  %v301_v19 = vadd.f32 %v300_v5, %v124_v46  ;;  %v398_v41 = vmax.f32 %v297_v18, 0.0  ;;  %v469_v56 = vmul.f32 %v1014_v50, %v397_v29 }
 0x110   :  { %v302_v13 = vpop.f32.mrf.mxu0  ;;  %v471_v17 = vmul.f32 %v1014_v50, %v399_v11  ;;  %v380_v21 = vadd.f32 %v379_v14, %v1016_v51  ;;  %v414_v43 = vmax.f32 %v388_v20, 0.0 }
 0x111   :  { %v666_v23 = vpop.f32.mrf.mxu1  ;;  %v303_v30 = vadd.f32 %v302_v13, %v124_v46  ;;  %v400_v42 = vmax.f32 %v301_v19, 0.0  ;;  %v470_v2 = vmul.f32 %v1014_v50, %v398_v41  ;;  %v490_v12 = vadd.f32 %v469_v56, %v466_v54  ;;  %v464_v13 = vpop.permute.xlu1 %463 }
 0x112   :  { %v304_v22 = vpop.f32.mrf.mxu0  ;;  %v516_v28 = vadd.f32 %v471_v17, %v468_v15  ;;  %v408_v31 = vmax.f32 %v380_v21, 0.0  ;;  %v391_v38 = vadd.f32 %v666_v23, %v1032_v24 }
 0x113   :  { %v305_v32 = vadd.f32 %v304_v22, %v129_v48  ;;  %v382_v34 = vpop.f32.mrf.mxu1  ;;  %v401_v57 = vmax.f32 %v303_v30, 0.0  ;;  %v472_v3 = vmul.f32 %v1018_v52, %v400_v42 }
 0x114   :  { %v306_v33 = vpop.f32.mrf.mxu0  ;;  %v517_v37 = vadd.f32 %v516_v28, %v474_v26  ;;  %v383_v39 = vadd.f32 %v382_v34, %v1020_v55  ;;  %v480_v36 = vmul.f32 %v1026_v7, %v408_v31  ;;  %v417_v63 = vmax.f32 %v391_v38, 0.0 }
 0x115   :  { %v307_v44 = vadd.f32 %v306_v33, %v129_v48  ;;  %v403_v59 = vmax.f32 %v305_v32, 0.0  ;;  %v459_v48 = vpop.permute.xlu0 %458  ;;  %v473_v49 = vmul.f32 %v1018_v52, %v401_v57  ;;  %v491_v20 = vadd.f32 %v490_v12, %v472_v3 }
 0x116   :  { %v310_v45 = vpop.f32.mrf.mxu0  ;;  %v518_v46 = vadd.f32 %v517_v37, %v477_v35  ;;  %v411_v47 = vmax.f32 %v383_v39, 0.0  ;;  %v486_v8 = vmul.f32 %v459_v48, %v414_v43  ;;  %v489_v50 = vmul.f32 %v464_v13, %v417_v63 }
 0x117   :  { %v311_v53 = vadd.f32 %v310_v45, %v1016_v51  ;;  %v404_v4 = vmax.f32 %v307_v44, 0.0  ;;  %v475_v14 = vmul.f32 %v1022_v58, %v403_v59 }
 0x118   :  { %v312_v60 = vpop.f32.mrf.mxu0  ;;  %v519_v62 = vadd.f32 %v518_v46, %v480_v36  ;;  %v483_v0 = vmul.f32 %v454_v40, %v411_v47 }
 0x119   :  { %v313_v5 = vadd.f32 %v312_v60, %v1016_v51  ;;  %v406_v10 = vmax.f32 %v311_v53, 0.0  ;;  %v503_v51 = vadd.f32 %v470_v2, %v467_v61  ;;  %v476_v21 = vmul.f32 %v1022_v58, %v404_v4 }
 0x11a   :  { %v314_v6 = vpop.f32.mrf.mxu0  ;;  %v520_v9 = vadd.f32 %v519_v62, %v483_v0  ;;  %v492_v30 = vadd.f32 %v491_v20, %v475_v14  ;;  %v530_v62 = vstv %s1067_s4  ;;  %s728_s4 = smov [#allocation3]  }
 0x11b   :  { %v315_v11 = vadd.f32 %v314_v6, %v1020_v55  ;;  %v407_v15 = vmax.f32 %v313_v5, 0.0  ;;  %v478_v25 = vmul.f32 %v1026_v7, %v406_v10  ;;  %v504_v27 = vadd.f32 %v503_v51, %v473_v49  ;;  %s587_s27 = sshll.u32 %s728_s4, 4  ;;  %s588_s27 = int_to_ptr.vmem [resolvable:$true] %s587_s27 }
 0x11c   :  { %v316_v16 = vpop.f32.mrf.mxu0  ;;  %v521_v17 = vadd.f32 %v520_v9, %v486_v8  ;;  %s704_s28 = scalar_lea.vmem %s588_s27, 48  ;;  %s708_s29 = scalar_lea.vmem %s588_s27, 64 }
 0x11d   :  { %v409_v18 = vmax.f32 %v315_v11, 0.0  ;;  %v317_v19 = vadd.f32 %v316_v16, %v1020_v55  ;;  %v479_v28 = vmul.f32 %v1026_v7, %v407_v15  ;;  %v505_v55 = vadd.f32 %v504_v27, %v476_v21  ;;  %p705_p0 = scmp.ne.s32.totalorder %s588_s27, %s704_s28  ;;  %p709_p1 = scmp.lt.s32.totalorder %s588_s27, %s588_s27 }
 0x11e   :  { %v320_v22 = vpop.f32.mrf.mxu0  ;;  %v522_v23 = vadd.f32 %v521_v17, %v489_v50  ;;  %v493_v38 = vadd.f32 %v492_v30, %v478_v25  ;;  %v556_v27 = vlaneseq  ;;  %p710_p2 = scmp.lt.s32.totalorder %s708_s29, %s704_s28 }
 0x11f   :  { %v410_v26 = vmax.f32 %v317_v19, 0.0  ;;  %v321_v52 = vadd.f32 %v320_v22, %v1024_v1  ;;  %v481_v32 = vmul.f32 %v454_v40, %v409_v18  ;;  %v506_v42 = vadd.f32 %v505_v55, %v479_v28 }
 0x120   :  { %v322_v29 = vpop.f32.mrf.mxu0  ;;  %v523_v31 = vrot.slane %v522_v23, 4  ;;  %vm578_vm1 = vcmp.lt.s32.totalorder %v556_v27, 384  ;;  %p711_p3 = por %p710_p2, %p709_p1 }
 0x121   :  { %v412_v33 = vmax.f32 %v321_v52, 0.0  ;;  %v482_v34 = vmul.f32 %v454_v40, %v410_v26  ;;  %v323_v35 = vadd.f32 %v322_v29, %v1024_v1  ;;  %v494_v7 = vadd.f32 %v493_v38, %v481_v32 }
 0x122   :  { %v324_v58 = vpop.f32.mrf.mxu0  ;;  %v524_v37 = vadd.f32 %v523_v31, %v522_v23  ;;  %v727_v26 = vmov 1966171168   ;;  %v557_v29 = vshrl.u32 %v556_v27, 7  ;;  %p712_p4 = pnand %p711_p3, %p705_p0 }
 0x123   :  { %v484_v39 = vmul.f32 %v459_v48, %v412_v33  ;;  %v325_v41 = vadd.f32 %v324_v58, %v1032_v24  ;;  %v413_v43 = vmax.f32 %v323_v35, 0.0  ;;  %v507_v47 = vadd.f32 %v506_v42, %v482_v34 }
 0x124   :  { %v326_v44 = vpop.f32.mrf.mxu0  ;;  %v525_v45 = vrot.slane %v524_v37, 2  ;;  %v554_v52 = vunpack.c.l.s4 %v727_v26 }
 0x125   :  { %v415_v36 = vmax.f32 %v325_v41, 0.0  ;;  %v327_v46 = vadd.f32 %v326_v44, %v1032_v24  ;;  %v485_v53 = vmul.f32 %v459_v48, %v413_v43  ;;  %v495_v40 = vadd.f32 %v494_v7, %v484_v39 }
 0x126   :  { %v526_v54 = vadd.f32 %v525_v45, %v524_v37  ;;  %v555_v28 = vunpack.c.0.s8 %v554_v52 }
 0x127   :  { %v487_v56 = vmul.f32 %v464_v13, %v415_v36  ;;  %v416_v1 = vmax.f32 %v327_v46, 0.0  ;;  %v508_v59 = vadd.f32 %v507_v47, %v485_v53 }
 0x128   :  { %v527_v57 = vrot.slane %v526_v54, 1  ;;  %v558_v32 = vsub.s32 %v555_v28, %v557_v29 }
 0x129   :  { %v496_v60 = vadd.f32 %v495_v40, %v487_v56  ;;  %v488_v61 = vmul.f32 %v464_v13, %v416_v1 }
 0x12a   :  { %v528_v63 = vadd.f32 %v527_v57, %v526_v54 }
 0x12b   :  { %v497_v0 = vrot.slane %v496_v60, 4  ;;  %v509_v2 = vadd.f32 %v508_v59, %v488_v61 }
 0x12c   :  { %v533_v4 = vadd.f32 %v530_v62, %v528_v63 }
 0x12d   :  { %v498_v3 = vadd.f32 %v497_v0, %v496_v60  ;;  %v510_v24 = vrot.slane %v509_v2, 4 }
 0x12e   :  { %v536_v8 = vsub.f32 0.0, %v533_v4 }
 0x12f   :  { %v499_v5 = vrot.slane %v498_v3, 2  ;;  %v511_v48 = vadd.f32 %v510_v24, %v509_v2 }
 0x130   :  { %v541_v49 = vmul.f32 1.442695, %v536_v8 }
 0x131   :  { %v500_v6 = vadd.f32 %v499_v5, %v498_v3  ;;  %v512_v9 = vrot.slane %v511_v48, 2 }
 0x132   :  { %692 = vpow2.f32 %v541_v49 }
 0x133   :  { %v501_v10 = vrot.slane %v500_v6, 1  ;;  %v513_v11 = vadd.f32 %v512_v9, %v511_v48 }
 0x135   :  { %v502_v12 = vadd.f32 %v501_v10, %v500_v6  ;;  %v514_v13 = vrot.slane %v513_v11, 1 }
 0x137   :  { %v531_v14 = vadd.f32 %v530_v62, %v502_v12  ;;  %v515_v15 = vadd.f32 %v514_v13, %v513_v11 }
 0x139   :  { %v534_v16 = vsub.f32 0.0, %v531_v14  ;;  %v532_v50 = vadd.f32 %v530_v62, %v515_v15 }
 0x13b   :  { %v537_v17 = vmul.f32 1.442695, %v534_v16  ;;  %v535_v18 = vsub.f32 0.0, %v532_v50 }
 0x13d   :  { %694 = vpow2.f32 %v537_v17  ;;  %v539_v19 = vmul.f32 1.442695, %v535_v18 }
 0x13f   :  { %696 = vpow2.f32 %v539_v19  ;;  %v693_v51 = vpop.eup %692 }
 0x140   :  { %v545_v20 = vadd.f32 1.0, %v693_v51 }
 0x142   :  { %698 = vrcp.f32 %v545_v20 }
 0x14a   :  { %v695_v21 = vpop.eup %694 }
 0x14b   :  { %v543_v22 = vadd.f32 1.0, %v695_v21 }
 0x14c   :  { %v697_v23 = vpop.eup %696 }
 0x14d   :  { %v544_v25 = vadd.f32 1.0, %v697_v23  ;;  %700 = vrcp.f32 %v543_v22 }
 0x14f   :  { %702 = vrcp.f32 %v544_v25  ;;  %v699_v30 = vpop.eup %698 }
 0x150   :  { %v566_v35 = vrot.slane %v699_v30, %v558_v32 }
 0x15a   :  { %v701_v31 = vpop.eup %700 }
 0x15c   :  { %v703_v33 = vpop.eup %702 }
 0x15d   :  { %v552_v55 = vcombine.low %v701_v31, %v703_v33 }
 0x15f   :  { %v559_v34 = vrot.slane %v552_v55, %v558_v32 }
 0x161   :  { %v567_v58 = vcombine.low %v559_v34, %v566_v35 }
 0x163   :  { %v574_v37 = vrot.slane %v567_v58, %v558_v32 }
 0x165   :  { %580 = vst.msk [vmem:[#allocation3] sm:$0x7] %vm578_vm1, %v574_v37 }
 0x166   :  { %715 = shalt.err (!%p712_p4)
}
 0x167   :  { %590 = dma.vmem_to_hbm [thread:$0]  %s588_s27, 48, %s1068_s5, [#allocation4]  }
 0x168   :  { %724 = dma.done.wait [#allocation4], 48  }
 0x169   :  { %725 = vsyncadd [#allocation4], 4294967248 }
 0x16a   :  { %594 = vsyncpa [#allocation4], 1 }

</bundles_post_ra>
